<compile_context>
chip_gen: v5e
topology: v5e:2x2
jax: 0.10.0
libtpu: 0.0.40
codegen_flags: <defaults>
</compile_context>

<pallas_src>
import jax
import jax.numpy as jnp
from jax.experimental import pallas as pl
from jax.experimental.pallas import tpu as pltpu

_BYPASS_BYTES = 4 * 1024 * 1024   # below this, the free reshape is the answer
_MAX_BLK_ROWS = 512               # multiple of 8 (and 16 for bf16 packing)
_MAX_LANE_COLS = 1024             # multiple of 128; 512x1024 f32 = 2 MiB/buffer


def _copy_kernel(x_ref, o_ref):
    # Single lane-dense block copy; Pallas double-buffers the HBM<->VMEM DMAs.
    o_ref[...] = x_ref[...]


def _pallas_copy_2d(x2d: jax.Array) -> jax.Array:
    """Tiled identity copy of a 2-D array (explicit materialization point)."""
    rows, cols = x2d.shape
    # Full-extent blocks are always legal; otherwise stay (8,128)-aligned.
    blk_rows = rows if rows <= _MAX_BLK_ROWS else _MAX_BLK_ROWS
    blk_cols = cols if cols <= _MAX_LANE_COLS else _MAX_LANE_COLS
    grid = (pl.cdiv(rows, blk_rows), pl.cdiv(cols, blk_cols))
    itemsize = jnp.dtype(x2d.dtype).itemsize
    return pl.pallas_call(
        _copy_kernel,
        out_shape=jax.ShapeDtypeStruct((rows, cols), x2d.dtype),
        grid_spec=pltpu.PrefetchScalarGridSpec(
            num_scalar_prefetch=0,
            grid=grid,
            in_specs=[pl.BlockSpec((blk_rows, blk_cols), lambda i, j: (i, j))],
            out_specs=pl.BlockSpec((blk_rows, blk_cols), lambda i, j: (i, j)),
        ),
        compiler_params=pltpu.CompilerParams(
            dimension_semantics=("parallel", "parallel"),
        ),
        cost_estimate=pl.CostEstimate(
            flops=0,
            transcendentals=0,
            bytes_accessed=2 * rows * cols * itemsize,
        ),
    )(x2d)


def flatten_layer(x: jax.Array, *, force_pallas: bool = False) -> jax.Array:
    """Pallas equivalent of FlattenLayer.forward: x.view(x.shape[0], -1)."""
    n = x.shape[0]
    flat = 1
    for d in x.shape[1:]:
        flat *= d

    # Row-major NCHW flatten is exactly the existing memory order: this reshape
    # is a zero-cost metadata change and already IS the module's output.
    x2 = jnp.reshape(x, (n, flat))

    total = n * flat
    nbytes = total * jnp.dtype(x.dtype).itemsize
    if not force_pallas and nbytes < _BYPASS_BYTES:
        # Small-input bypass: no kernel launch, no extra HBM traffic.
        return x2

    # Explicit materialization requested / large input: retile the flat element
    # stream so every block is lane-dense and (8,128)-aligned.
    cols = 0
    for cand in (_MAX_LANE_COLS, 512, 256, 128):
        if total % cand == 0:
            cols = cand
            break
    if cols:
        xs = jnp.reshape(x2, (total // cols, cols))   # free metadata reshape
        out = _pallas_copy_2d(xs)
        return jnp.reshape(out, (n, flat))            # free metadata reshape

    # Odd total (not a multiple of 128): fall back to tiling the logical
    # (N, flat) shape; Pallas masks the partial edge blocks.
    return _pallas_copy_2d(x2)


if __name__ == "__main__":
    key = jax.random.PRNGKey(0)
    # Small NCHW input consistent with what FlattenLayer typically receives.
    x = jax.random.normal(key, (2, 4, 16, 16), dtype=jnp.float32)
    ref = jnp.reshape(x, (x.shape[0], -1))

    # Default path: small input -> pure metadata reshape (no kernel launch).
    out = jax.block_until_ready(flatten_layer(x))
    assert out.shape == ref.shape, (out.shape, ref.shape)
    assert out.dtype == ref.dtype, (out.dtype, ref.dtype)
    assert bool(jnp.all(out == ref)), "flatten (bypass path) mismatch"

    # Also exercise the Pallas copy path on TPU to verify it compiles and runs.
    out_p = jax.block_until_ready(flatten_layer(x, force_pallas=True))
    assert out_p.shape == ref.shape, (out_p.shape, ref.shape)
    assert out_p.dtype == ref.dtype, (out_p.dtype, ref.dtype)
    assert bool(jnp.all(out_p == ref)), "flatten (Pallas path) mismatch"

    print("KERNEL_OK")
</pallas_src>

<mosaic_0001>
module attributes {stable_mosaic.version = 11 : i64} {
  func.func @_copy_kernel(%arg0: i32, %arg1: i32, %arg2: memref<2x1024xf32, #tpu.memory_space<vmem>>, %arg3: memref<2x1024xf32, #tpu.memory_space<vmem>>) attributes {dimension_semantics = [#tpu.dimension_semantics<parallel>, #tpu.dimension_semantics<parallel>], iteration_bounds = array<i64: 1, 1>, scalar_prefetch = 0 : i64, scratch_operands = 0 : i64, tpu.core_type = #tpu.core_type<tc>, window_params = [{transform_indices = @transform_0, window_bounds = array<i64: 2, 1024>}, {transform_indices = @transform_1, window_bounds = array<i64: 2, 1024>}]} {
    %c0 = arith.constant 0 : index
    %c0_0 = arith.constant 0 : index
    %0 = vector.load %arg2[%c0, %c0_0] : memref<2x1024xf32, #tpu.memory_space<vmem>>, vector<2x1024xf32>
    %c0_1 = arith.constant 0 : index
    %c0_2 = arith.constant 0 : index
    %1 = vector.load %arg3[%c0_1, %c0_2] : memref<2x1024xf32, #tpu.memory_space<vmem>>, vector<2x1024xf32>
    tpu.vector_store %arg3[%c0_1, %c0_2], %0 {strides = array<i32>} : memref<2x1024xf32, #tpu.memory_space<vmem>>, vector<2x1024xf32>,
    return
  }
  func.func @transform_0(%arg0: i32, %arg1: i32) -> (i32, i32) {
    %c0_i32 = arith.constant 0 : i32
    return %arg0, %arg1 : i32, i32
  }
  func.func @transform_1(%arg0: i32, %arg1: i32) -> (i32, i32) {
    %c0_i32 = arith.constant 0 : i32
    return %arg0, %arg1 : i32, i32
  }
}

</mosaic_0001>

<bundles_post_ra>
// kernel: tpu_custom_call.1
= control target key start
LH: loop header
LB: loop body
LE: loop exit
PB: predicated region body
PF: predicated region fallthrough
CT: control target
= control target key end

     0   :  { %6 = vsyncpa [#allocation3], 0  ;;  %s116_s0 = inlined_call_operand.hbm [shape: f32[2,1024], index: 0, kind: input, shape index: {}]   ;;  %s117_s1 = inlined_call_operand.hbm [shape: f32[2,1024], index: 1, kind: output, shape index: {}]  }
   0x1   :  { %7 = vsyncpa [#allocation4], 0  ;;  %s13_s8 = sshll.u32 %s116_s0, 4  ;;  %s98_s9 = smov [#allocation2]   ;;  %s14_s8 = int_to_ptr.hbm [resolvable:$true] %s13_s8 }
   0x2   :  { %s15_s10 = sshll.u32 %s98_s9, 4  ;;  %s16_s10 = int_to_ptr.vmem [resolvable:$true] %s15_s10 }
   0x3   :  { %18 = dma.hbm_to_vmem [thread:$0]  %s14_s8, 256, %s16_s10, [#allocation3]  }
   0x4   :  { %94 = dma.done.wait [#allocation3], 256  }
   0x5   :  { %95 = vsyncadd [#allocation3], 4294967040  ;;  %s99_s11 = smov [#allocation5]   ;;  %s34_s15 = sshll.u32 %s117_s1, 4  ;;  %v23_v0 = vld [vmem:[#allocation2] sm:$0xff]  ;;  %v24_v1 = vld [vmem:[#allocation2 + $0x8] sm:$0xff]  ;;  %s35_s15 = int_to_ptr.hbm [resolvable:$true] %s34_s15 }
   0x6   :  { %s32_s12 = sshll.u32 %s99_s11, 4  ;;  %25 = vst [vmem:[#allocation5] sm:$0xff] %v23_v0  ;;  %s33_s12 = int_to_ptr.vmem [resolvable:$true] %s32_s12 }
   0x7   :  { %26 = vst [vmem:[#allocation5 + $0x8] sm:$0xff] %v24_v1 }
   0x8   :  { %37 = dma.vmem_to_hbm [thread:$0]  %s33_s12, 256, %s35_s15, [#allocation4]  }
   0x9   :  { %96 = dma.done.wait [#allocation4], 256  }
   0xa   :  { %97 = vsyncadd [#allocation4], 4294967040 }
   0xb   :  { %42 = vsyncpa [#allocation3], 1 }
   0xc   :  { %43 = vsyncpa [#allocation4], 1 }

</bundles_post_ra>
